<compile_context>
chip_gen: v7x
topology: tpu7x:2x2x1
jax: 0.10.0
libtpu: 0.0.40
codegen_flags: <defaults>
</compile_context>

<pallas_src>
import functools

import jax
import jax.numpy as jnp
from jax.experimental import pallas as pl
from jax.experimental.pallas import tpu as pltpu


def _round_up(x, m):
    return ((x + m - 1) // m) * m


# Large enough for the default batch_tile=4096 double-buffered footprint
# (~35-40 MiB worst case with 3 views incl. lane padding + temporaries), inside
# v7x's 64 MiB physical VMEM and far below v5e/v6e's 128 MiB.  v5e's *default*
# scoped limit is only 16 MiB, so it must be raised explicitly for big tiles.
_VMEM_LIMIT_BYTES = 48 * 1024 * 1024


def _aggregator_kernel(*refs, n_views, out_dim):
    """refs = (x_0..x_{N-1}, w_0..w_{N-1}, bias, out, attn).

    x_i  : (TB, d_i)  f32  streamed batch tile of view i
    w_i  : (d_i, O+1) f32  resident; cols [0,O) = Linear_i.weight^T,
                           col O = Linear_i.weight^T @ conv_w (1x1 conv folded)
    bias : (N,  O+1)  f32  row i = [b_i, b_i . conv_w + conv_b]
    out  : (TB, O)    f32
    attn : (TB, N)    f32
    """
    x_refs = refs[:n_views]
    w_refs = refs[n_views:2 * n_views]
    b_ref = refs[2 * n_views]
    out_ref = refs[2 * n_views + 1]
    attn_ref = refs[2 * n_views + 2]

    bias = b_ref[...]                                          # (N, O+1), tiny

    proj, logits = [], []
    for i in range(n_views):                                   # N small & static
        p = jnp.dot(x_refs[i][...], w_refs[i][...],
                    preferred_element_type=jnp.float32)        # one MXU GEMM / view
        p = p + bias[i:i + 1, :]                               # (TB, O+1)
        proj.append(p[:, :out_dim])                            # (TB, O)
        logits.append(p[:, out_dim:out_dim + 1])               # (TB, 1)
    logits = jnp.concatenate(logits, axis=-1)                  # (TB, N)

    # Numerically-stable softmax over the view axis.  Exact normalization:
    # the kernel is HBM-bound, so the divide is free, and the returned
    # attention weights sum to 1 exactly.
    m = jnp.max(logits, axis=-1, keepdims=True)
    e = jnp.exp(logits - m)
    attn = e / jnp.sum(e, axis=-1, keepdims=True)              # (TB, N)

    # Attention-weighted sum over views (unrolled; VPU/XLU have large slack).
    acc = proj[0] * attn[:, 0:1]
    for i in range(1, n_views):
        acc = acc + proj[i] * attn[:, i:i + 1]

    out_ref[...] = acc.astype(out_ref.dtype)
    attn_ref[...] = attn.astype(attn_ref.dtype)


def fold_aggregator_params(weights, biases, conv_w, conv_b):
    """One-time parameter folding (hoisted out of the per-call hot path).

    weights[i]: (O, d_i) like nn.Linear.weight; biases[i]: (O,)
    conv_w: (O,) squeezed Conv1d(O, 1, 1).weight; conv_b: scalar.
    Returns (tuple of (d_i, O+1) f32 folded weights, (N, O+1) f32 bias rows).
    """
    o = int(weights[0].shape[0])
    cw = jnp.asarray(conv_w, jnp.float32).reshape(o)
    cb = jnp.asarray(conv_b, jnp.float32).reshape(())
    w_folded, b_rows = [], []
    for w_i, b_i in zip(weights, biases):
        wt = jnp.asarray(w_i, jnp.float32).T                   # (d_i, O)
        w_folded.append(jnp.concatenate([wt, wt @ cw[:, None]], axis=1))
        b_i = jnp.asarray(b_i, jnp.float32)
        b_rows.append(jnp.concatenate([b_i, (jnp.dot(b_i, cw) + cb)[None]]))
    return tuple(w_folded), jnp.stack(b_rows)


def attentive_aggregator(x_list, w_folded, b_all, *, batch_tile=4096):
    """Fused forward pass.  Returns (out (B, O) f32, attn (B, N) f32)."""
    n = len(x_list)
    batch = int(x_list[0].shape[0])
    dims = [int(x.shape[1]) for x in x_list]
    o = int(b_all.shape[1]) - 1

    # Batch tile: big (amortize ~0.35 us/step overhead), multiple of 8, and
    # capped so the "parallel" grid has >= 2 steps (v7x has 2 TensorCores).
    tb = max(8, _round_up(min(int(batch_tile), batch), 8))
    if pl.cdiv(batch, tb) < 2 and tb >= 16:
        tb = _round_up(pl.cdiv(tb, 2), 8)
    grid = (pl.cdiv(batch, tb),)                               # boundary block masked

    kernel = functools.partial(_aggregator_kernel, n_views=n, out_dim=o)

    x_specs = [pl.BlockSpec((tb, d), lambda i: (i, 0)) for d in dims]
    w_specs = [pl.BlockSpec((d, o + 1), lambda i: (0, 0)) for d in dims]   # resident
    b_spec = pl.BlockSpec((n, o + 1), lambda i: (0, 0))                    # resident

    x_f32 = [jnp.asarray(x, jnp.float32) for x in x_list]

    out, attn = pl.pallas_call(
        kernel,
        out_shape=(jax.ShapeDtypeStruct((batch, o), jnp.float32),
                   jax.ShapeDtypeStruct((batch, n), jnp.float32)),
        grid=grid,
        in_specs=x_specs + w_specs + [b_spec],
        out_specs=(pl.BlockSpec((tb, o), lambda i: (i, 0)),
                   pl.BlockSpec((tb, n), lambda i: (i, 0))),
        compiler_params=pltpu.CompilerParams(
            dimension_semantics=("parallel",),
            vmem_limit_bytes=_VMEM_LIMIT_BYTES),
    )(*x_f32, *w_folded, b_all)
    return out, attn


def reference(x_list, weights, biases, conv_w, conv_b):
    proj = [x @ w.T + b for x, w, b in zip(x_list, weights, biases)]
    xp = jnp.stack(proj, axis=-1)                              # (B, O, N)
    logits = jnp.einsum('bon,o->bn', xp, conv_w) + conv_b      # (B, N)
    attn = jax.nn.softmax(logits, axis=-1)
    out = jnp.sum(xp * attn[:, None, :], axis=-1)              # (B, O)
    return out, attn


if __name__ == "__main__":
    input_dim_list = [32, 48, 64]
    output_dim = min(input_dim_list)      # 32, matches the PyTorch default
    batch = 16

    key = jax.random.PRNGKey(0)
    keys = jax.random.split(key, 2 * len(input_dim_list) + 3)

    weights, biases, x_list = [], [], []
    for i, d in enumerate(input_dim_list):
        weights.append(jax.random.normal(keys[2 * i], (output_dim, d),
                                         jnp.float32) / jnp.sqrt(d))
        biases.append(jax.random.normal(keys[2 * i + 1], (output_dim,),
                                        jnp.float32) * 0.01)
    conv_w = jax.random.normal(keys[-3], (output_dim,), jnp.float32) / jnp.sqrt(output_dim)
    conv_b = jax.random.normal(keys[-2], (), jnp.float32) * 0.01
    xkeys = jax.random.split(keys[-1], len(input_dim_list))
    for k, d in zip(xkeys, input_dim_list):
        x_list.append(jax.random.normal(k, (batch, d), jnp.float32))

    # Parameter folding is done once (outside the per-call hot path).
    w_folded, b_all = fold_aggregator_params(weights, biases, conv_w, conv_b)

    out, attn = attentive_aggregator(x_list, w_folded, b_all)
    jax.block_until_ready((out, attn))

    out_ref, attn_ref = reference(x_list, weights, biases, conv_w, conv_b)
    assert out.shape == (batch, output_dim) and attn.shape == (batch, len(input_dim_list))
    # Default-precision MXU GEMM rounds operands to bf16 -> ~1e-2-level deviation
    # from the pure-f32 reference; 2e-2 tolerance covers it with margin.
    assert jnp.allclose(out, out_ref, rtol=2e-2, atol=2e-2)
    assert jnp.allclose(attn, attn_ref, rtol=2e-2, atol=2e-2)
    print("KERNEL_OK")
</pallas_src>

<mosaic_0001>
module attributes {stable_mosaic.version = 11 : i64} {
  func.func @_aggregator_kernel(%arg0: i32, %arg1: memref<8x32xf32, #tpu.memory_space<vmem>>, %arg2: memref<8x48xf32, #tpu.memory_space<vmem>>, %arg3: memref<8x64xf32, #tpu.memory_space<vmem>>, %arg4: memref<32x33xf32, #tpu.memory_space<vmem>>, %arg5: memref<48x33xf32, #tpu.memory_space<vmem>>, %arg6: memref<64x33xf32, #tpu.memory_space<vmem>>, %arg7: memref<3x33xf32, #tpu.memory_space<vmem>>, %arg8: memref<8x32xf32, #tpu.memory_space<vmem>>, %arg9: memref<8x3xf32, #tpu.memory_space<vmem>>) attributes {dimension_semantics = [#tpu.dimension_semantics<parallel>], iteration_bounds = array<i64: 2>, scalar_prefetch = 0 : i64, scratch_operands = 0 : i64, tpu.core_type = #tpu.core_type<tc>, window_params = [{transform_indices = @transform_0, window_bounds = array<i64: 8, 32>}, {transform_indices = @transform_1, window_bounds = array<i64: 8, 48>}, {transform_indices = @transform_2, window_bounds = array<i64: 8, 64>}, {pipeline_mode = #tpu.pipeline_mode<synchronous>, transform_indices = @transform_3, window_bounds = array<i64: 32, 33>}, {pipeline_mode = #tpu.pipeline_mode<synchronous>, transform_indices = @transform_4, window_bounds = array<i64: 48, 33>}, {pipeline_mode = #tpu.pipeline_mode<synchronous>, transform_indices = @transform_5, window_bounds = array<i64: 64, 33>}, {pipeline_mode = #tpu.pipeline_mode<synchronous>, transform_indices = @transform_6, window_bounds = array<i64: 3, 33>}, {transform_indices = @transform_7, window_bounds = array<i64: 8, 32>}, {transform_indices = @transform_8, window_bounds = array<i64: 8, 3>}]} {
    %c0 = arith.constant 0 : index
    %c0_0 = arith.constant 0 : index
    %0 = vector.load %arg7[%c0, %c0_0] : memref<3x33xf32, #tpu.memory_space<vmem>>, vector<3x33xf32>
    %c0_1 = arith.constant 0 : index
    %c0_2 = arith.constant 0 : index
    %1 = vector.load %arg1[%c0_1, %c0_2] : memref<8x32xf32, #tpu.memory_space<vmem>>, vector<8x32xf32>
    %c0_3 = arith.constant 0 : index
    %c0_4 = arith.constant 0 : index
    %2 = vector.load %arg4[%c0_3, %c0_4] : memref<32x33xf32, #tpu.memory_space<vmem>>, vector<32x33xf32>
    %cst = arith.constant dense<0.000000e+00> : vector<8x33xf32>
    %3 = tpu.matmul %1, %2, %cst {dimension_numbers = #tpu.dot_dimension_numbers<[1], [0], [0], [1], [0, 0, 1, 1], [], []>} : vector<8x32xf32>, vector<32x33xf32>, vector<8x33xf32> -> vector<8x33xf32>
    %4 = vector.extract_strided_slice %0 {offsets = [0, 0], sizes = [1, 33], strides = [1, 1]} : vector<3x33xf32> to vector<1x33xf32>
    %5 = vector.broadcast %4 : vector<1x33xf32> to vector<8x33xf32>
    %6 = arith.addf %3, %5 : vector<8x33xf32>
    %7 = vector.extract_strided_slice %6 {offsets = [0, 0], sizes = [8, 32], strides = [1, 1]} : vector<8x33xf32> to vector<8x32xf32>
    %8 = vector.extract_strided_slice %6 {offsets = [0, 32], sizes = [8, 1], strides = [1, 1]} : vector<8x33xf32> to vector<8x1xf32>
    %c0_5 = arith.constant 0 : index
    %c0_6 = arith.constant 0 : index
    %9 = vector.load %arg2[%c0_5, %c0_6] : memref<8x48xf32, #tpu.memory_space<vmem>>, vector<8x48xf32>
    %c0_7 = arith.constant 0 : index
    %c0_8 = arith.constant 0 : index
    %10 = vector.load %arg5[%c0_7, %c0_8] : memref<48x33xf32, #tpu.memory_space<vmem>>, vector<48x33xf32>
    %cst_9 = arith.constant dense<0.000000e+00> : vector<8x33xf32>
    %11 = tpu.matmul %9, %10, %cst_9 {dimension_numbers = #tpu.dot_dimension_numbers<[1], [0], [0], [1], [0, 0, 1, 1], [], []>} : vector<8x48xf32>, vector<48x33xf32>, vector<8x33xf32> -> vector<8x33xf32>
    %12 = vector.extract_strided_slice %0 {offsets = [1, 0], sizes = [1, 33], strides = [1, 1]} : vector<3x33xf32> to vector<1x33xf32>
    %13 = vector.broadcast %12 : vector<1x33xf32> to vector<8x33xf32>
    %14 = arith.addf %11, %13 : vector<8x33xf32>
    %15 = vector.extract_strided_slice %14 {offsets = [0, 0], sizes = [8, 32], strides = [1, 1]} : vector<8x33xf32> to vector<8x32xf32>
    %16 = vector.extract_strided_slice %14 {offsets = [0, 32], sizes = [8, 1], strides = [1, 1]} : vector<8x33xf32> to vector<8x1xf32>
    %c0_10 = arith.constant 0 : index
    %c0_11 = arith.constant 0 : index
    %17 = vector.load %arg3[%c0_10, %c0_11] : memref<8x64xf32, #tpu.memory_space<vmem>>, vector<8x64xf32>
    %c0_12 = arith.constant 0 : index
    %c0_13 = arith.constant 0 : index
    %18 = vector.load %arg6[%c0_12, %c0_13] : memref<64x33xf32, #tpu.memory_space<vmem>>, vector<64x33xf32>
    %cst_14 = arith.constant dense<0.000000e+00> : vector<8x33xf32>
    %19 = tpu.matmul %17, %18, %cst_14 {dimension_numbers = #tpu.dot_dimension_numbers<[1], [0], [0], [1], [0, 0, 1, 1], [], []>} : vector<8x64xf32>, vector<64x33xf32>, vector<8x33xf32> -> vector<8x33xf32>
    %20 = vector.extract_strided_slice %0 {offsets = [2, 0], sizes = [1, 33], strides = [1, 1]} : vector<3x33xf32> to vector<1x33xf32>
    %21 = vector.broadcast %20 : vector<1x33xf32> to vector<8x33xf32>
    %22 = arith.addf %19, %21 : vector<8x33xf32>
    %23 = vector.extract_strided_slice %22 {offsets = [0, 0], sizes = [8, 32], strides = [1, 1]} : vector<8x33xf32> to vector<8x32xf32>
    %24 = vector.extract_strided_slice %22 {offsets = [0, 32], sizes = [8, 1], strides = [1, 1]} : vector<8x33xf32> to vector<8x1xf32>
    %25 = tpu.concatenate %8, %16, %24 in 1 : vector<8x1xf32>, vector<8x1xf32>, vector<8x1xf32> -> vector<8x3xf32>
    %cst_15 = arith.constant dense<0xFF800000> : vector<8xf32>
    %26 = vector.multi_reduction <maximumf>, %25, %cst_15 [1] : vector<8x3xf32> to vector<8xf32>
    %27 = vector.shape_cast %26 : vector<8xf32> to vector<8x1xf32>
    %28 = vector.broadcast %27 : vector<8x1xf32> to vector<8x3xf32>
    %29 = arith.subf %25, %28 : vector<8x3xf32>
    %30 = math.exp %29 : vector<8x3xf32>
    %cst_16 = arith.constant dense<0.000000e+00> : vector<8xf32>
    %31 = vector.multi_reduction <add>, %30, %cst_16 [1] : vector<8x3xf32> to vector<8xf32>
    %32 = vector.shape_cast %31 : vector<8xf32> to vector<8x1xf32>
    %33 = vector.broadcast %32 : vector<8x1xf32> to vector<8x3xf32>
    %34 = arith.divf %30, %33 : vector<8x3xf32>
    %35 = vector.extract_strided_slice %34 {offsets = [0, 0], sizes = [8, 1], strides = [1, 1]} : vector<8x3xf32> to vector<8x1xf32>
    %36 = vector.broadcast %35 : vector<8x1xf32> to vector<8x32xf32>
    %37 = arith.mulf %7, %36 : vector<8x32xf32>
    %38 = vector.extract_strided_slice %34 {offsets = [0, 1], sizes = [8, 1], strides = [1, 1]} : vector<8x3xf32> to vector<8x1xf32>
    %39 = vector.broadcast %38 : vector<8x1xf32> to vector<8x32xf32>
    %40 = arith.mulf %15, %39 : vector<8x32xf32>
    %41 = arith.addf %37, %40 : vector<8x32xf32>
    %42 = vector.extract_strided_slice %34 {offsets = [0, 2], sizes = [8, 1], strides = [1, 1]} : vector<8x3xf32> to vector<8x1xf32>
    %43 = vector.broadcast %42 : vector<8x1xf32> to vector<8x32xf32>
    %44 = arith.mulf %23, %43 : vector<8x32xf32>
    %45 = arith.addf %41, %44 : vector<8x32xf32>
    %c0_17 = arith.constant 0 : index
    %c0_18 = arith.constant 0 : index
    %46 = vector.load %arg8[%c0_17, %c0_18] : memref<8x32xf32, #tpu.memory_space<vmem>>, vector<8x32xf32>
    tpu.vector_store %arg8[%c0_17, %c0_18], %45 {strides = array<i32>} : memref<8x32xf32, #tpu.memory_space<vmem>>, vector<8x32xf32>,
    %c0_19 = arith.constant 0 : index
    %c0_20 = arith.constant 0 : index
    %47 = vector.load %arg9[%c0_19, %c0_20] : memref<8x3xf32, #tpu.memory_space<vmem>>, vector<8x3xf32>
    tpu.vector_store %arg9[%c0_19, %c0_20], %34 {strides = array<i32>} : memref<8x3xf32, #tpu.memory_space<vmem>>, vector<8x3xf32>,
    return
  }
  func.func @transform_0(%arg0: i32) -> (i32, i32) {
    %c0_i32 = arith.constant 0 : i32
    %c0_i32_0 = arith.constant 0 : i32
    return %arg0, %c0_i32 : i32, i32
  }
  func.func @transform_1(%arg0: i32) -> (i32, i32) {
    %c0_i32 = arith.constant 0 : i32
    %c0_i32_0 = arith.constant 0 : i32
    return %arg0, %c0_i32 : i32, i32
  }
  func.func @transform_2(%arg0: i32) -> (i32, i32) {
    %c0_i32 = arith.constant 0 : i32
    %c0_i32_0 = arith.constant 0 : i32
    return %arg0, %c0_i32 : i32, i32
  }
  func.func @transform_3(%arg0: i32) -> (i32, i32) {
    %c0_i32 = arith.constant 0 : i32
    %c0_i32_0 = arith.constant 0 : i32
    %c0_i32_1 = arith.constant 0 : i32
    return %c0_i32, %c0_i32_0 : i32, i32
  }
  func.func @transform_4(%arg0: i32) -> (i32, i32) {
    %c0_i32 = arith.constant 0 : i32
    %c0_i32_0 = arith.constant 0 : i32
    %c0_i32_1 = arith.constant 0 : i32
    return %c0_i32, %c0_i32_0 : i32, i32
  }
  func.func @transform_5(%arg0: i32) -> (i32, i32) {
    %c0_i32 = arith.constant 0 : i32
    %c0_i32_0 = arith.constant 0 : i32
    %c0_i32_1 = arith.constant 0 : i32
    return %c0_i32, %c0_i32_0 : i32, i32
  }
  func.func @transform_6(%arg0: i32) -> (i32, i32) {
    %c0_i32 = arith.constant 0 : i32
    %c0_i32_0 = arith.constant 0 : i32
    %c0_i32_1 = arith.constant 0 : i32
    return %c0_i32, %c0_i32_0 : i32, i32
  }
  func.func @transform_7(%arg0: i32) -> (i32, i32) {
    %c0_i32 = arith.constant 0 : i32
    %c0_i32_0 = arith.constant 0 : i32
    return %arg0, %c0_i32 : i32, i32
  }
  func.func @transform_8(%arg0: i32) -> (i32, i32) {
    %c0_i32 = arith.constant 0 : i32
    %c0_i32_0 = arith.constant 0 : i32
    return %arg0, %c0_i32 : i32, i32
  }
}

</mosaic_0001>

<bundles_post_ra>
// kernel: tpu_custom_call.1
= control target key start
LH: loop header
LB: loop body
LE: loop exit
PB: predicated region body
PF: predicated region fallthrough
CT: control target
= control target key end

     0   :  { %14 = vsyncpa [#allocation3], 0  ;;  %s1242_s0 = inlined_call_operand.vmem [shape: f32[16,32], index: 0, kind: input, shape index: {}]   ;;  %s1243_s1 = inlined_call_operand.vmem [shape: f32[16,48], index: 1, kind: input, shape index: {}]   ;;  %s1244_s2 = inlined_call_operand.vmem [shape: f32[16,64], index: 2, kind: input, shape index: {}]   ;;  %s1245_s3 = inlined_call_operand.vmem [shape: f32[32,33], index: 3, kind: input, shape index: {}]   ;;  %s1246_s4 = inlined_call_operand.vmem [shape: f32[48,33], index: 4, kind: input, shape index: {}]   ;;  %s1247_s5 = inlined_call_operand.vmem [shape: f32[64,33], index: 5, kind: input, shape index: {}]   ;;  %s1248_s6 = inlined_call_operand.vmem [shape: f32[3,33], index: 6, kind: input, shape index: {}]   ;;  %s1249_s7 = inlined_call_operand.hbm [shape: f32[16,32], index: 7, kind: output, shape index: {0}]   ;;  %s1250_s8 = inlined_call_operand.vmem [shape: f32[16,3], index: 8, kind: output, shape index: {1}]  }
   0x1   :  { %16 = vsyncpa [#allocation3 + $0x1], 0  ;;  %s1062_s27 = smov 0   ;;  %s1064_s28 = smov 0  }
   0x2   :  { %s1066_s29 = smov 0   ;;  %s1068_s30 = smov 0  }
   0x3 LB: > { %s1083_s9 = sadd.s32 4294967295, %s1005_s30   ;;  %s778_s10 = sadd.s32 4294967294, %s1005_s30   ;;  %s1005_s30 = sphi %s1068_s30, %s1256_s30   ;;  %s1001_s29 = sphi %s1066_s29, %s1255_s29   ;;  %s997_s28 = sphi %s1064_s28, %s1254_s28   ;;  %s993_s27 = sphi %s1062_s27, %s1253_s27  }
   0x4   : > { %s1087_s11 = sadd.s32 1, %s1005_s30   ;;  %s191_s12 = sadd.s32 1, %s1001_s29 }
   0x5   : > { %s188_s13 = ssub.s32 %s1005_s30, %s1087_s11  ;;  %p201_p0 = scmp.ne.s32.totalorder %s1001_s29, %s997_s28 }
   0x6   : > { %p189_p1 = scmp.eq.s32.totalorder %s188_s13, 0  ;;  %p202_p2 = scmp.eq.s32.totalorder %s1083_s9, 1 }
   0x7   : > { %p207_p3 = scmp.ne.s32.totalorder %s997_s28, %s993_s27  ;;  %p208_p4 = scmp.eq.s32.totalorder %s778_s10, 1 }
   0x8   : > { %s1098_s14 = scalar_select %p189_p1, %s1001_s29, %s191_s12  }
   0x9   : > { %p1100_p5 = por %p202_p2, %p201_p0  ;;  %p1104_p6 = por %p208_p4, %p207_p3 }
   0xa   : > { %p781_p7 = scmp.ge.s32.totalorder %s1005_s30, 1  ;;  %p285_p8 = scmp.lt.s32.totalorder %s1005_s30, 3 }
   0xc   : > { %p286_p9 = pnand %p781_p7, %p285_p8 }
   0xd   : > { %v348_v0 = vld [vmem:[%s1245_s3] sm:$0xff] (!%p286_p9)  ;;  %v349_v1 = vld [vmem:[%s1245_s3 + $0x8] sm:$0xff] (!%p286_p9)  ;;  %v350_v2 = vld [vmem:[%s1245_s3 + $0x10] sm:$0xff] (!%p286_p9)  ;;  %v1007_v3 = vmov (!%p286_p9), 0.0|0.0   ;;  %p330_p10 = scmp.lt.s32.totalorder (!%p286_p9), %s1083_s9, 1  ;;  %vm1008_vm0 = vmmov (!%p286_p9), 0   ;;  %v352_v32 = vlaneseq (!%p286_p9) }
   0xe   : > { %289 = sbr.rel (%p286_p9) target bundleno = 834 (0x342), region = 48  ;;  %860 = vmatprep.subr.bf16.mxu1 (!%p286_p9), %v1007_v3  ;;  %v861_v4 = vpack.c.bf16 (!%p286_p9), %v349_v1, %v348_v0  ;;  %875 = vmatprep.subr.bf16.mxu0 (!%p286_p9), %v1007_v3  ;;  %v351_v5 = vld [vmem:[%s1245_s3 + $0x18] sm:$0xff] (!%p286_p9)  ;;  %v516_v6 = vld [vmem:[%s1247_s5] sm:$0xff] (!%p286_p9)  ;;  %v517_v7 = vld [vmem:[%s1247_s5 + $0x8] sm:$0xff] (!%p286_p9)  ;;  %v1009_v9 = vmov (!%p286_p9), 0.0   ;;  %vm356_vm1 = vcmask (!%p286_p9), 261120  }
   0xf   : > { %v876_v8 = vpack.c.bf16 (!%p286_p9), %v517_v7, %v516_v6  ;;  %823 = vmatprep.mubr.msk.f32.mxu1 (!%p286_p9), %vm1008_vm0, %v1009_v9  ;;  %v518_v10 = vld [vmem:[%s1247_s5 + $0x10] sm:$0xff] (!%p286_p9)  ;;  %857 = vmatprep.mubr.msk.f32.mxu0 (!%p286_p9), %vm1008_vm0, %v1009_v9  ;;  %v864_v11 = vpack.c.bf16 (!%p286_p9), %v351_v5, %v350_v2  ;;  %v519_v12 = vld [vmem:[%s1247_s5 + $0x18] sm:$0xff] (!%p286_p9)  ;;  %v431_v13 = vld [vmem:[%s1246_s4] sm:$0xff] (!%p286_p9)  ;;  %vm528_vm2 = vcmask (!%p286_p9), 523264   ;;  %vm441_vm3 = vcmask (!%p286_p9), 392192   ;;  %s1010_s13 = smov (!%p286_p9), 96  }
  0x10   : > { %862 = vmatpush3.bf16.msra.mxu1 (!%p286_p9), %v861_v4  ;;  %v432_v14 = vld [vmem:[%s1246_s4 + $0x8] sm:$0xff] (!%p286_p9)  ;;  %v879_v15 = vpack.c.bf16 (!%p286_p9), %v519_v12, %v518_v10  ;;  %v520_v16 = vld [vmem:[%s1247_s5 + $0x20] sm:$0xff] (!%p286_p9)  ;;  %v433_v20 = vld [vmem:[%s1246_s4 + $0x10] sm:$0xff] (!%p286_p9)  ;;  %v353_v33 = vshrl.u32 (!%p286_p9), %v352_v32, 7  ;;  %s1011_s17 = smov (!%p286_p9), 98   ;;  %s1012_s19 = smov (!%p286_p9), 97  }
  0x11   : > { %863 = vmatprep.subr.bf16.mxu1 (!%p286_p9), %v1007_v3  ;;  %877 = vmatpush3.bf16.msra.mxu0 (!%p286_p9), %v876_v8  ;;  %v521_v17 = vld [vmem:[%s1247_s5 + $0x28] sm:$0xff] (!%p286_p9)  ;;  %v867_v19 = vpack.c.bf16 (!%p286_p9), %v432_v14, %v431_v13  ;;  %v434_v21 = vld [vmem:[%s1246_s4 + $0x18] sm:$0xff] (!%p286_p9)  ;;  %v522_v23 = vld [vmem:[%s1247_s5 + $0x30] sm:$0xff] (!%p286_p9)  ;;  %vm614_vm4 = vcmask (!%p286_p9), 7168   ;;  %vm616_vm5 = vcmask (!%p286_p9), 15360   ;;  %vm618_vm6 = vcmask (!%p286_p9), 23552  }
  0x12   : > { %878 = vmatprep.subr.bf16.mxu0 (!%p286_p9), %v1007_v3  ;;  %v882_v22 = vpack.c.bf16 (!%p286_p9), %v521_v17, %v520_v16  ;;  %v523_v24 = vld [vmem:[%s1247_s5 + $0x38] sm:$0xff] (!%p286_p9)  ;;  %v870_v25 = vpack.c.bf16 (!%p286_p9), %v434_v21, %v433_v20  ;;  %v435_v26 = vld [vmem:[%s1246_s4 + $0x20] sm:$0xff] (!%p286_p9)  ;;  %v436_v27 = vld [vmem:[%s1246_s4 + $0x28] sm:$0xff] (!%p286_p9)  ;;  %v354_v34 = vsub.s32 (!%p286_p9), 0, %v353_v33  ;;  %v526_v40 = vsub.s32 (!%p286_p9), 2, %v353_v33  ;;  %s791_s24 = sshll.u32 (!%p286_p9), %s1083_s9, 7 }
  0x13   : > { %v885_v28 = vpack.c.bf16 (!%p286_p9), %v523_v24, %v522_v23  ;;  %v873_v29 = vpack.c.bf16 (!%p286_p9), %v436_v27, %v435_v26  ;;  %v346_v35 = vld [vmem:[%s1248_s6] sm:$0x7] (!%p286_p9)  ;;  %v439_v41 = vsub.s32 (!%p286_p9), 1, %v353_v33  ;;  %v1013_v61 = vmov (!%p286_p9), 1  }
  0x14   : > { %865 = vmatpush3.bf16.msra.mxu1 (!%p286_p9), %v864_v11  ;;  %v355_v36 = vrot.slane (!%p286_p9), %v346_v35, %v354_v34  ;;  %v527_v42 = vrot.slane (!%p286_p9), %v346_v35, %v526_v40  ;;  %936 = vset.pattern.permute.xlu1 (!%p286_p9), %v1013_v61  ;;  %v1014_v62 = vmov (!%p286_p9), 0   ;;  %v1015_v2 = vmov (!%p286_p9), 2  }
  0x15   : > { %s331_s18 = scalar_select %p330_p10, %s1083_s9, 1  ;;  %866 = vmatprep.subr.bf16.mxu1 %v1007_v3  ;;  %880 = vmatpush3.bf16.msra.mxu0 %v879_v15  ;;  %v440_v43 = vrot.slane %v346_v35, %v439_v41 }
  0x16   : > { %881 = vmatprep.subr.bf16.mxu0 %v1007_v3  ;;  %935 = vset.pattern.permute.xlu0 %v1014_v62  ;;  %s1016_s9 = smov [#allocation2]  }
  0x17   : > { %s1144_s25 = sshll.u32 %s331_s18, 3 }
  0x18   : > { %s333_s20 = scalar_lea.vmem %s1242_s0, %s1144_s25  ;;  %s341_s22 = scalar_lea.vmem %s1244_s2, %s1144_s25 }
  0x19   : > { %v347_v18 = vld [vmem:[%s333_s20] sm:$0xff]  ;;  %883 = vmatpush3.bf16.msra.mxu0 %v882_v22  ;;  %s337_s26 = scalar_lea.vmem %s1243_s1, %s1144_s25  ;;  %s345_s21 = scalar_lea.vmem %s1250_s8, %s1144_s25 }
  0x1a   : > { %824 = vmatmul.mubr.msk.f32.vlgmr.msra.gmra.mrb[0].mxu1 %vm356_vm1, %v347_v18  ;;  %884 = vmatprep.subr.bf16.mxu0 %v1007_v3  ;;  %v515_v30 = vld [vmem:[%s341_s22] sm:$0xff]  ;;  %s321_s22 = sand.u32 1, %s997_s28   ;;  %s947_s20 = sshll.u32 %s1016_s9, 4  ;;  %s948_s20 = int_to_ptr.vmem [resolvable:$false] %s947_s20 }
  0x1b   : > { %868 = vmatpush3.bf16.msra.mxu1 %v867_v19  ;;  %838 = vmatprep.mubr.msk.f32.mxu1 %vm1008_vm0, %v1009_v9  ;;  %v430_v31 = vld [vmem:[%s337_s26] sm:$0xff]  ;;  %s782_s23 = sshll.u32 %s321_s22, 3  ;;  %s949_s18 = scalar_lea.vmem %s948_s20, 256 }
  0x1c   : > { %869 = vmatprep.subr.bf16.mxu1 %v1007_v3  ;;  %s323_s25 = scalar_lea.vmem [#allocation2], %s782_s23 }
  0x1d   : > { %886 = vmatpush3.bf16.msra.mxu0 %v885_v28  ;;  %s668_s26 = sshll.u32 %s323_s25, 4  ;;  %s1201_s26 = int_to_ptr.vmem [resolvable:$true] %s668_s26 }
  0x1e   : > { %p950_p0 = scmp.lt.s32.totalorder %s1201_s26, %s948_s20 }
  0x1f   : > { %871 = vmatpush3.bf16.msra.mxu1 %v870_v25 }
  0x20   : > { %872 = vmatprep.subr.bf16.mxu1 %v1007_v3  ;;  %858 = vmatmul.mubr.msk.f32.vlgmr.msra.gmra.mrb[0].mxu0 %vm528_vm2, %v515_v30 }
  0x23   : > { %874 = vmatpush3.bf16.msra.mxu1 %v873_v29 }
  0x26   : > { %839 = vmatmul.mubr.msk.f32.vlgmr.msra.gmra.mrb[2].mxu1 %vm441_vm3, %v430_v31 }
  0xed   : > { %v426_v37 = vpop.f32.mrb[0].mxu1 }
  0xee   : > { %v427_v38 = vadd.f32 %v426_v37, %v355_v36  ;;  %v825_v39 = vpop.f32.mrb[1].mxu1 }
  0xf0   : > { %603 = vrot.lane.b32.xlu0 %v427_v38, %s1010_s13  ;;  %s1199_s13 = scalar_lea.hbm %s1249_s7, %s791_s24 }
  0xf3   : > { %v598_v44 = vpop.f32.mrb[0].mxu0 }
  0xf4   : > { %v599_v45 = vadd.f32 %v598_v44, %v527_v42  ;;  %v859_v46 = vpop.f32.mrb[1].mxu0 }
  0xf6   : > { %611 = vrot.lane.b32.xlu1 %v599_v45, %s1011_s17  ;;  %s651_s17 = scalar_lea.sflag [#allocation3], %s321_s22 }
  0xf9   : > { %v511_v47 = vpop.f32.mrb[2].mxu1 }
  0xfa   : > { %v512_v48 = vadd.f32 %v511_v47, %v440_v43  ;;  %v840_v49 = vpop.f32.mrb[3].mxu1 }
  0xfc   : > { %607 = vrot.lane.b32.xlu0 %v512_v48, %s1012_s19  ;;  %s943_s19 = scalar_lea.vmem %s1201_s26, 128 }
  0xfd   : > { %p944_p11 = scmp.ne.s32.totalorder %s1201_s26, %s943_s19  ;;  %p951_p1 = scmp.lt.s32.totalorder %s949_s18, %s943_s19 }
  0xff   : > { %p945_p12 = pnand %p944_p11, %p1100_p5  ;;  %p952_p2 = por %p951_p1, %p950_p0 }
 0x101   : > { %p946_p13 = pneg %p945_p12 }
 0x103   : > { %p953_p3 = pnand %p952_p2, %p946_p13 }
 0x162   : > { %v604_v50 = vpop.permute.xlu0 %603 }
 0x168   : > { %v612_v51 = vpop.permute.xlu1 %611 }
 0x16e   : > { %v608_v52 = vpop.permute.xlu0 %607 }
 0x16f   : > { %v615_v53 = vsel %vm614_vm4, %v604_v50, %v608_v52 }
 0x170   : > { %v617_v54 = vsel %vm616_vm5, %v615_v53, %v612_v51 }
 0x171   : > { %v619_v55 = vsel %vm618_vm6, %v617_v54, -inf }
 0x172   : > { %620 = vmax.xlane.f32.xlu1 %v619_v55 }
 0x1ff   : > { %v621_v56 = vpop.xlane.xlu1 %620 }
 0x200   : > { %v622_v57 = vsub.f32 %v617_v54, %v621_v56 }
 0x202   : > { %v623_v58 = vmul.f32 1.442695, %v622_v57 }
 0x204   : > { %939 = vpow2.f32 %v623_v58 }
 0x20e   : > { %v940_v59 = vpop.eup %939 }
 0x20f   : > { %v625_v60 = vsel %vm618_vm6, %v940_v59, 0.0 }
 0x210   : > { %626 = vadd.xlane.f32.xlu0 %v625_v60 }
 0x29d   : > { %v627_v63 = vpop.xlane.xlu0 %626 }
 0x29e   : > { %941 = vrcp.f32 %v627_v63 }
 0x2a8   : > { %v942_v0 = vpop.eup %941 }
 0x2a9   : > { %v629_v1 = vmul.f32 %v942_v0, %v940_v59 }
 0x2ab   : > { %637 = vperm.xlu1 %936, %v629_v1   ;;  %649 = vst.msk [vmem:[%s345_s21] sm:$0xff] %vm618_vm6, %v629_v1  ;;  %632 = vperm.xlu0 %935, %v629_v1  }
 0x2af   : > { %937 = vset.pattern.permute.xlu1 %v1015_v2  ;;  %938 = vset.pattern.permute.xlu0 %v1015_v2 }
 0x2b0   : > { %643 = vperm.xlu1 %937, %v629_v1  }
 0x32a   : > { %v638_v3 = vpop.permute.xlu1 %637  ;;  %v633_v4 = vpop.permute.xlu0 %632 }
 0x32b   : > { %v640_v5 = vmul.f32 %v638_v3, %v512_v48  ;;  %v635_v6 = vmul.f32 %v633_v4, %v427_v38 }
 0x32d   : > { %v641_v8 = vadd.f32 %v640_v5, %v635_v6 }
 0x32f   : > { %v644_v7 = vpop.permute.xlu1 %643 }
 0x330   : > { %v646_v9 = vmul.f32 %v644_v7, %v599_v45 }
 0x332   : > { %v647_v10 = vadd.f32 %v646_v9, %v641_v8 }
 0x334   : > { %648 = vst.msk [vmem:[%s323_s25] sm:$0xff] %vm356_vm1, %v647_v10 }
 0x335   : > { %956 = shalt.err (!%p953_p3)
}
 0x336   : > { %s957_s21 = scalar_lea.hbm %s1199_s13, 128  ;;  %s961_s24 = scalar_lea.hbm %s1249_s7, 256 }
 0x337   : > { %p958_p4 = scmp.ne.s32.totalorder %s1199_s13, %s957_s21  ;;  %p962_p9 = scmp.lt.u32.totalorder %s1199_s13, %s1249_s7 }
 0x338   : > { %p963_p10 = scmp.lt.u32.totalorder %s961_s24, %s957_s21  ;;  %p965_p12 = scmp.lt.u32.totalorder %s957_s21, %s1199_s13 }
 0x339   : > { %p959_p7 = pnand %p958_p4, %p1100_p5 }
 0x33a   : > { %p964_p11 = por %p963_p10, %p962_p9 }
 0x33b   : > { %p960_p8 = pneg %p959_p7 }
 0x33c   : > { %p966_p13 = por %p965_p12, %p964_p11 }
 0x33e   : > { %p967_p0 = pnand %p966_p13, %p960_p8 }
 0x340   : > { %970 = shalt.err (!%p967_p0)
}
 0x341   : > { %887 = dma.vmem_to_hbm [thread:$0]  (%p1100_p5), %s1201_s26, 128, %s1199_s13, %s651_s17  }
 0x342 PF: > { %p893_p1 = scmp.ge.s32.totalorder %s1005_s30, 2  ;;  %s683_s12 = sand.u32 1, %s993_s27  }
 0x343   : > { %s684_s19 = scalar_lea.sflag [#allocation3], %s683_s12 }
 0x344   : > { %p890_p2 = pnand %p893_p1, %p1104_p6 }
 0x346   : > { %988 = dma.done.wait (!%p890_p2), %s684_s19, 128  }
 0x347   : > { %990 = vsyncadd (!%p890_p2), %s684_s19, 4294967168  ;;  %p19_p3 = scmp.ge.s32.totalorder %s1087_s11, 4   ;;  %s1253_s27 = smov %s997_s28 }
 0x348   : > { %s1254_s28 = smov %s1001_s29  ;;  %s1255_s29 = smov %s1098_s14 }
 0x349   : > { %s1256_s30 = smov %s1087_s11  ;;  %21 = sbr.rel (!%p19_p3) target bundleno = 3 (0x3), region = 101 }
 0x350   :  { %696 = vsyncpa [#allocation3], 1 }
 0x351   :  { %698 = vsyncpa [#allocation3 + $0x1], 1 }

</bundles_post_ra>
